<compile_context>
chip_gen: v5e
topology: v5e:2x2
jax: 0.10.0
libtpu: 0.0.40
codegen_flags: <defaults>
</compile_context>

<pallas_src>
import functools

import jax
import jax.numpy as jnp
import numpy as np
from jax.experimental import pallas as pl
from jax.experimental.pallas import tpu as pltpu


def conv_bn_relu_kernel(x_ref, w_ref, scale_ref, shift_ref, o_ref, *, K, H_out):
    # x_ref:     (Hp, Cpad)              padded, channel-flattened input image
    # w_ref:     (K, Cpad, lanes_pad)    per-ky block-banded "wide" conv weights
    # scale_ref: (1, lanes_pad)          folded BN scale (per output lane)
    # shift_ref: (1, lanes_pad)          folded BN shift (per output lane)
    # o_ref:     (H_out, lanes_pad)      lane-dense output block
    acc = jnp.zeros(o_ref.shape, jnp.float32)
    for ky in range(K):                          # static unroll over vertical taps
        rows = x_ref[pl.ds(ky, H_out), :]        # rows ky .. ky + H_out - 1
        acc = acc + jnp.dot(rows, w_ref[ky],
                            preferred_element_type=jnp.float32)
    y = acc * scale_ref[...] + shift_ref[...]    # fused inference BatchNorm
    o_ref[...] = jnp.maximum(y, 0.0).astype(o_ref.dtype)    # ReLU


def _round_up(n, m):
    return ((n + m - 1) // m) * m


def conv2d_layer(x, conv_w, gamma, beta, running_mean, running_var,
                 *, stride=1, eps=1e-5):
    """Fused Conv2d(bias=False) + BatchNorm2d(eval) + ReLU.

    x:       (B, Cin, H, W)        NCHW, like the PyTorch module
    conv_w:  (Cout, Cin, K, K)     PyTorch OIHW conv weight
    returns: (B, Cout, H_out, W_out)
    """
    B, Cin, H, W = x.shape
    Cout, Cin_w, K, K2 = conv_w.shape
    assert Cin_w == Cin and K2 == K
    assert stride == 1, "module default stride=1 is what this kernel implements"
    pad = K // 2
    H_out = H + 2 * pad - K + 1
    W_out = W + 2 * pad - K + 1
    Hp, Wp = H + 2 * pad, W + 2 * pad

    Cflat = Wp * Cin                          # flattened (column, channel) lanes
    Cpad = _round_up(Cflat, 128)              # lane-aligned contraction dim
    lanes = W_out * Cout                      # true output lane width
    lanes_pad = _round_up(lanes, 128)         # lane-aligned output width

    # ---- layout plumbing (wrapper side): NCHW -> padded NHWC -> (B, Hp, Cpad)
    x_nhwc = jnp.transpose(x, (0, 2, 3, 1))
    x_pad = jnp.pad(x_nhwc, ((0, 0), (pad, pad), (pad, pad), (0, 0)))
    x_flat = x_pad.reshape(B, Hp, Cflat)
    if Cpad != Cflat:
        x_flat = jnp.pad(x_flat, ((0, 0), (0, 0), (0, Cpad - Cflat)))

    # ---- one-time parameter preprocessing: per-ky block-banded "wide" weights.
    #   w_wide[ky, (w + kx)*Cin + ci, w*Cout + co] = conv_w[co, ci, ky, kx]
    # Zero rows/cols in the padded region keep the matmul exact.
    w_np = np.asarray(conv_w, np.float32)
    w_wide = np.zeros((K, Cpad, lanes_pad), np.float32)
    for ky in range(K):
        for kx in range(K):
            blk = w_np[:, :, ky, kx].T                     # (Cin, Cout)
            for wpos in range(W_out):
                r = (wpos * stride + kx) * Cin
                c = wpos * Cout
                w_wide[ky, r:r + Cin, c:c + Cout] = blk
    w_wide = jnp.asarray(w_wide, x.dtype)

    # ---- fold inference-mode BatchNorm into per-lane scale / shift.
    scale = np.asarray(gamma, np.float64) / np.sqrt(
        np.asarray(running_var, np.float64) + eps)
    shift = np.asarray(beta, np.float64) - np.asarray(running_mean, np.float64) * scale
    scale_wide = np.zeros((1, lanes_pad), np.float32)
    shift_wide = np.zeros((1, lanes_pad), np.float32)
    scale_wide[0, :lanes] = np.tile(scale, W_out)
    shift_wide[0, :lanes] = np.tile(shift, W_out)
    scale_wide = jnp.asarray(scale_wide)
    shift_wide = jnp.asarray(shift_wide)

    kernel = functools.partial(conv_bn_relu_kernel, K=K, H_out=H_out)

    itemsize = jnp.dtype(x.dtype).itemsize
    flops = 2 * B * K * H_out * Cpad * lanes_pad
    bytes_accessed = int((x_flat.size + w_wide.size + B * H_out * lanes_pad)
                         * itemsize + (scale_wide.size + shift_wide.size) * 4)

    out_flat = pl.pallas_call(
        kernel,
        out_shape=jax.ShapeDtypeStruct((B, H_out, lanes_pad), x.dtype),
        grid_spec=pltpu.PrefetchScalarGridSpec(
            num_scalar_prefetch=0,
            grid=(B,),
            in_specs=[
                pl.BlockSpec((pl.Squeezed(), Hp, Cpad), lambda b: (b, 0, 0)),
                pl.BlockSpec((K, Cpad, lanes_pad), lambda b: (0, 0, 0)),
                pl.BlockSpec((1, lanes_pad), lambda b: (0, 0)),
                pl.BlockSpec((1, lanes_pad), lambda b: (0, 0)),
            ],
            out_specs=pl.BlockSpec((pl.Squeezed(), H_out, lanes_pad),
                                   lambda b: (b, 0, 0)),
        ),
        compiler_params=pltpu.CompilerParams(
            dimension_semantics=("parallel",)),
        cost_estimate=pl.CostEstimate(flops=flops, transcendentals=0,
                                      bytes_accessed=bytes_accessed),
    )(x_flat, w_wide, scale_wide, shift_wide)

    # (B, H_out, lanes_pad) -> (B, Cout, H_out, W_out)  (layout plumbing only)
    out = out_flat[:, :, :lanes].reshape(B, H_out, W_out, Cout)
    return out.transpose(0, 3, 1, 2)


def reference(x, conv_w, gamma, beta, running_mean, running_var, *, eps=1e-5):
    """Pure-JAX reference of Conv2dLayer.forward (BatchNorm in eval mode)."""
    pad = conv_w.shape[-1] // 2
    y = jax.lax.conv_general_dilated(
        x, conv_w, window_strides=(1, 1),
        padding=((pad, pad), (pad, pad)),
        dimension_numbers=("NCHW", "OIHW", "NCHW"),
        precision=jax.lax.Precision.HIGHEST)
    inv = 1.0 / jnp.sqrt(running_var + eps)
    y = ((y - running_mean[None, :, None, None]) * inv[None, :, None, None]
         * gamma[None, :, None, None] + beta[None, :, None, None])
    return jnp.maximum(y, 0.0)


if __name__ == "__main__":
    # Small shapes consistent with the module: NCHW input, 3x3 conv, stride 1.
    B, Cin, Cout, H, W, K = 2, 4, 8, 16, 16, 3

    key = jax.random.PRNGKey(0)
    keys = jax.random.split(key, 6)

    x = jax.random.normal(keys[0], (B, Cin, H, W), jnp.float32)
    conv_w = 0.1 * jax.random.normal(keys[1], (Cout, Cin, K, K), jnp.float32)

    # Deterministic synthetic BatchNorm2d parameters / running statistics.
    gamma = 1.0 + 0.1 * jax.random.normal(keys[2], (Cout,), jnp.float32)
    beta = 0.1 * jax.random.normal(keys[3], (Cout,), jnp.float32)
    running_mean = 0.1 * jax.random.normal(keys[4], (Cout,), jnp.float32)
    running_var = jax.random.uniform(keys[5], (Cout,), jnp.float32,
                                     minval=0.5, maxval=1.5)

    out = conv2d_layer(x, conv_w, gamma, beta, running_mean, running_var)
    out = jax.block_until_ready(out)

    ref = reference(x, conv_w, gamma, beta, running_mean, running_var)
    np.testing.assert_allclose(np.asarray(out), np.asarray(ref),
                               rtol=1e-4, atol=1e-4)

    print("KERNEL_OK")
</pallas_src>

<mosaic_0001>
module attributes {stable_mosaic.version = 11 : i64} {
  func.func @conv_bn_relu_kernel(%arg0: i32, %arg1: memref<1x18x128xf32, #tpu.memory_space<vmem>>, %arg2: memref<3x128x128xf32, #tpu.memory_space<vmem>>, %arg3: memref<1x128xf32, #tpu.memory_space<vmem>>, %arg4: memref<1x128xf32, #tpu.memory_space<vmem>>, %arg5: memref<1x16x128xf32, #tpu.memory_space<vmem>>) attributes {dimension_semantics = [#tpu.dimension_semantics<parallel>], iteration_bounds = array<i64: 2>, scalar_prefetch = 0 : i64, scratch_operands = 0 : i64, tpu.core_type = #tpu.core_type<tc>, window_params = [{transform_indices = @transform_0, window_bounds = array<i64: 1, 18, 128>}, {pipeline_mode = #tpu.pipeline_mode<synchronous>, transform_indices = @transform_1, window_bounds = array<i64: 3, 128, 128>}, {pipeline_mode = #tpu.pipeline_mode<synchronous>, transform_indices = @transform_2, window_bounds = array<i64: 1, 128>}, {pipeline_mode = #tpu.pipeline_mode<synchronous>, transform_indices = @transform_3, window_bounds = array<i64: 1, 128>}, {transform_indices = @transform_4, window_bounds = array<i64: 1, 16, 128>}]} {
    %cst = arith.constant 0.000000e+00 : f32
    %0 = vector.broadcast %cst : f32 to vector<16x128xf32>
    %c0 = arith.constant 0 : index
    %c0_0 = arith.constant 0 : index
    %c0_1 = arith.constant 0 : index
    %1 = vector.load %arg1[%c0, %c0_0, %c0_1] : memref<1x18x128xf32, #tpu.memory_space<vmem>>, vector<1x16x128xf32>
    %2 = vector.shape_cast %1 : vector<1x16x128xf32> to vector<16x128xf32>
    %c0_2 = arith.constant 0 : index
    %c0_3 = arith.constant 0 : index
    %c0_4 = arith.constant 0 : index
    %3 = vector.load %arg2[%c0_2, %c0_3, %c0_4] : memref<3x128x128xf32, #tpu.memory_space<vmem>>, vector<1x128x128xf32>
    %4 = vector.shape_cast %3 : vector<1x128x128xf32> to vector<128x128xf32>
    %cst_5 = arith.constant dense<0.000000e+00> : vector<16x128xf32>
    %5 = tpu.matmul %2, %4, %cst_5 {dimension_numbers = #tpu.dot_dimension_numbers<[1], [0], [0], [1], [0, 0, 1, 1], [], []>} : vector<16x128xf32>, vector<128x128xf32>, vector<16x128xf32> -> vector<16x128xf32>
    %6 = arith.addf %0, %5 : vector<16x128xf32>
    %c0_6 = arith.constant 0 : index
    %c1 = arith.constant 1 : index
    %c0_7 = arith.constant 0 : index
    %7 = vector.load %arg1[%c0_6, %c1, %c0_7] : memref<1x18x128xf32, #tpu.memory_space<vmem>>, vector<1x16x128xf32>
    %8 = vector.shape_cast %7 : vector<1x16x128xf32> to vector<16x128xf32>
    %c1_8 = arith.constant 1 : index
    %c0_9 = arith.constant 0 : index
    %c0_10 = arith.constant 0 : index
    %9 = vector.load %arg2[%c1_8, %c0_9, %c0_10] : memref<3x128x128xf32, #tpu.memory_space<vmem>>, vector<1x128x128xf32>
    %10 = vector.shape_cast %9 : vector<1x128x128xf32> to vector<128x128xf32>
    %cst_11 = arith.constant dense<0.000000e+00> : vector<16x128xf32>
    %11 = tpu.matmul %8, %10, %cst_11 {dimension_numbers = #tpu.dot_dimension_numbers<[1], [0], [0], [1], [0, 0, 1, 1], [], []>} : vector<16x128xf32>, vector<128x128xf32>, vector<16x128xf32> -> vector<16x128xf32>
    %12 = arith.addf %6, %11 : vector<16x128xf32>
    %c0_12 = arith.constant 0 : index
    %c2 = arith.constant 2 : index
    %c0_13 = arith.constant 0 : index
    %13 = vector.load %arg1[%c0_12, %c2, %c0_13] : memref<1x18x128xf32, #tpu.memory_space<vmem>>, vector<1x16x128xf32>
    %14 = vector.shape_cast %13 : vector<1x16x128xf32> to vector<16x128xf32>
    %c2_14 = arith.constant 2 : index
    %c0_15 = arith.constant 0 : index
    %c0_16 = arith.constant 0 : index
    %15 = vector.load %arg2[%c2_14, %c0_15, %c0_16] : memref<3x128x128xf32, #tpu.memory_space<vmem>>, vector<1x128x128xf32>
    %16 = vector.shape_cast %15 : vector<1x128x128xf32> to vector<128x128xf32>
    %cst_17 = arith.constant dense<0.000000e+00> : vector<16x128xf32>
    %17 = tpu.matmul %14, %16, %cst_17 {dimension_numbers = #tpu.dot_dimension_numbers<[1], [0], [0], [1], [0, 0, 1, 1], [], []>} : vector<16x128xf32>, vector<128x128xf32>, vector<16x128xf32> -> vector<16x128xf32>
    %18 = arith.addf %12, %17 : vector<16x128xf32>
    %c0_18 = arith.constant 0 : index
    %c0_19 = arith.constant 0 : index
    %19 = vector.load %arg3[%c0_18, %c0_19] : memref<1x128xf32, #tpu.memory_space<vmem>>, vector<1x128xf32>
    %20 = vector.broadcast %19 : vector<1x128xf32> to vector<16x128xf32>
    %21 = arith.mulf %18, %20 : vector<16x128xf32>
    %c0_20 = arith.constant 0 : index
    %c0_21 = arith.constant 0 : index
    %22 = vector.load %arg4[%c0_20, %c0_21] : memref<1x128xf32, #tpu.memory_space<vmem>>, vector<1x128xf32>
    %23 = vector.broadcast %22 : vector<1x128xf32> to vector<16x128xf32>
    %24 = arith.addf %21, %23 : vector<16x128xf32>
    %cst_22 = arith.constant 0.000000e+00 : f32
    %25 = vector.broadcast %cst_22 : f32 to vector<16x128xf32>
    %26 = arith.maximumf %24, %25 : vector<16x128xf32>
    %c0_23 = arith.constant 0 : index
    %c0_24 = arith.constant 0 : index
    %c0_25 = arith.constant 0 : index
    %27 = vector.load %arg5[%c0_23, %c0_24, %c0_25] : memref<1x16x128xf32, #tpu.memory_space<vmem>>, vector<1x16x128xf32>
    %28 = vector.shape_cast %27 : vector<1x16x128xf32> to vector<16x128xf32>
    %29 = vector.shape_cast %26 : vector<16x128xf32> to vector<1x16x128xf32>
    tpu.vector_store %arg5[%c0_23, %c0_24, %c0_25], %29 {strides = array<i32>} : memref<1x16x128xf32, #tpu.memory_space<vmem>>, vector<1x16x128xf32>,
    return
  }
  func.func @transform_0(%arg0: i32) -> (i32, i32, i32) {
    %c0_i32 = arith.constant 0 : i32
    %c0_i32_0 = arith.constant 0 : i32
    %c0_i32_1 = arith.constant 0 : i32
    return %arg0, %c0_i32, %c0_i32_0 : i32, i32, i32
  }
  func.func @transform_1(%arg0: i32) -> (i32, i32, i32) {
    %c0_i32 = arith.constant 0 : i32
    %c0_i32_0 = arith.constant 0 : i32
    %c0_i32_1 = arith.constant 0 : i32
    %c0_i32_2 = arith.constant 0 : i32
    return %c0_i32, %c0_i32_0, %c0_i32_1 : i32, i32, i32
  }
  func.func @transform_2(%arg0: i32) -> (i32, i32) {
    %c0_i32 = arith.constant 0 : i32
    %c0_i32_0 = arith.constant 0 : i32
    %c0_i32_1 = arith.constant 0 : i32
    return %c0_i32, %c0_i32_0 : i32, i32
  }
  func.func @transform_3(%arg0: i32) -> (i32, i32) {
    %c0_i32 = arith.constant 0 : i32
    %c0_i32_0 = arith.constant 0 : i32
    %c0_i32_1 = arith.constant 0 : i32
    return %c0_i32, %c0_i32_0 : i32, i32
  }
  func.func @transform_4(%arg0: i32) -> (i32, i32, i32) {
    %c0_i32 = arith.constant 0 : i32
    %c0_i32_0 = arith.constant 0 : i32
    %c0_i32_1 = arith.constant 0 : i32
    return %arg0, %c0_i32, %c0_i32_0 : i32, i32, i32
  }
}

</mosaic_0001>

<bundles_post_ra>
// kernel: tpu_custom_call.1
= control target key start
LH: loop header
LB: loop body
LE: loop exit
PB: predicated region body
PF: predicated region fallthrough
CT: control target
= control target key end

     0   :  { %9 = vsyncpa [#allocation3], 0  ;;  %s767_s0 = inlined_call_operand.vmem [shape: f32[2,18,128], index: 0, kind: input, shape index: {}]   ;;  %s768_s1 = inlined_call_operand.hbm [shape: f32[3,128,128], index: 1, kind: input, shape index: {}]   ;;  %s769_s2 = inlined_call_operand.vmem [shape: f32[1,128], index: 2, kind: input, shape index: {}]   ;;  %s770_s3 = inlined_call_operand.vmem [shape: f32[1,128], index: 3, kind: input, shape index: {}]   ;;  %s771_s4 = inlined_call_operand.hbm [shape: f32[2,16,128], index: 4, kind: output, shape index: {}]  }
   0x1   :  { %10 = vsyncpa [#allocation4], 0 }
   0x2   :  { %12 = vsyncpa [#allocation4 + $0x1], 0  ;;  %s661_s15 = smov 0   ;;  %s663_s16 = smov 0  }
   0x3   :  { %s665_s17 = smov 0   ;;  %s667_s18 = smov 0  }
   0x4 LB: > { %s682_s19 = sadd.s32 4294967295, %s629_s18   ;;  %s446_s20 = sadd.s32 4294967294, %s629_s18   ;;  %s629_s18 = sphi %s667_s18, %s777_s18   ;;  %s625_s17 = sphi %s665_s17, %s776_s17   ;;  %s621_s16 = sphi %s663_s16, %s775_s16   ;;  %s617_s15 = sphi %s661_s15, %s774_s15  }
   0x5   : > { %s686_s21 = sadd.s32 1, %s629_s18   ;;  %s114_s22 = sadd.s32 1, %s625_s17 }
   0x6   : > { %s111_s23 = ssub.s32 %s629_s18, %s686_s21  ;;  %p124_p0 = scmp.ne.s32.totalorder %s625_s17, %s621_s16 }
   0x7   : > { %p112_p1 = scmp.eq.s32.totalorder %s111_s23, 0  ;;  %p125_p2 = scmp.eq.s32.totalorder %s682_s19, 1 }
   0x8   : > { %p130_p3 = scmp.ne.s32.totalorder %s621_s16, %s617_s15  ;;  %p131_p4 = scmp.eq.s32.totalorder %s446_s20, 1 }
   0x9   : > { %s697_s24 = scalar_select %p112_p1, %s625_s17, %s114_s22  }
   0xa   : > { %p699_p5 = por %p125_p2, %p124_p0  ;;  %p703_p6 = por %p131_p4, %p130_p3 }
   0xb   : > { %p447_p7 = scmp.ge.s32.totalorder %s629_s18, 1  ;;  %p138_p8 = scmp.lt.s32.totalorder %s629_s18, 3 }
   0xc   : > { %p491_p9 = scmp.eq.s32.totalorder %s682_s19, 0  ;;  %s149_s29 = sshll.u32 %s768_s1, 4  ;;  %s150_s29 = int_to_ptr.hbm [resolvable:$true] %s149_s29 }
   0xd   : > { %p139_p10 = pnand %p447_p7, %p138_p8  ;;  %s631_s30 = smov [#allocation2]  }
   0xe   : > { %s151_s5 = sshll.u32 %s631_s30, 4  ;;  %s632_s6 = smov 128   ;;  %s152_s5 = int_to_ptr.vmem [resolvable:$true] %s151_s5 }
   0xf   : > { %p483_p11 = pneg %p139_p10  ;;  %s633_s7 = smov 8  }
  0x10   : > { %181 = sbr.rel (%p139_p10) target bundleno = 206 (0xce), region = 36 }
  0x11   : > { %p484_p12 = pnand %p491_p9, %p483_p11 }
  0x13   : > { %486 = dma.hbm_to_vmem [thread:$0]  (!%p484_p12), %s150_s29, 6144, %s152_s5, [#allocation3], %s632_s6, %s632_s6, %s633_s7  }
  0x15   : > { %608 = dma.done.wait (%p491_p9), [#allocation3], 6144  }
  0x16   : > { %610 = vsyncadd (%p491_p9), [#allocation3], 4294961152  ;;  %v314_v0 = vld [vmem:[#allocation2 + $0x178] sm:$0xff]  ;;  %v313_v1 = vld [vmem:[#allocation2 + $0x170] sm:$0xff]  ;;  %p208_p13 = scmp.lt.s32.totalorder %s682_s19, 1  ;;  %s205_s20 = sand.u32 1, %s621_s16  }
  0x17   : > { %v249_v2 = vld [vmem:[#allocation2 + $0xf8] sm:$0xff]  ;;  %315 = vmatpush.msra.mxu2 %v314_v0  ;;  %v248_v4 = vld [vmem:[#allocation2 + $0xf0] sm:$0xff]  ;;  %v312_v5 = vld [vmem:[#allocation2 + $0x168] sm:$0xff]  ;;  %s452_s27 = sshll.u32 %s205_s20, 4  ;;  %s459_s28 = sshll.u32 %s682_s19, 4 }
  0x18   : > { %250 = vmatpush.msra.mxu0 %v249_v2  ;;  %v230_v3 = vld [vmem:[#allocation2 + $0x78] sm:$0xff]  ;;  %460 = vmatpush.msra.mxu3 %v249_v2  ;;  %v229_v6 = vld [vmem:[#allocation2 + $0x70] sm:$0xff]  ;;  %v247_v7 = vld [vmem:[#allocation2 + $0xe8] sm:$0xff]  ;;  %s723_s8 = scalar_select %p208_p13, %s682_s19, 1 }
  0x19   : > { %273 = vmatpush.msra.mxu1 %v230_v3  ;;  %316 = vmatpush.msra.mxu2 %v313_v1  ;;  %v228_v8 = vld [vmem:[#allocation2 + $0x68] sm:$0xff]  ;;  %v311_v9 = vld [vmem:[#allocation2 + $0x160] sm:$0xff]  ;;  %v310_v12 = vld [vmem:[#allocation2 + $0x158] sm:$0xff]  ;;  %s368_s5 = scalar_lea.hbm %s771_s4, %s459_s28  ;;  %s207_s6 = scalar_lea.vmem [#allocation5], %s452_s27 }
  0x1a   : > { %251 = vmatpush.msra.mxu0 %v248_v4  ;;  %461 = vmatpush.msra.mxu3 %v248_v4  ;;  %v246_v10 = vld [vmem:[#allocation2 + $0xe0] sm:$0xff]  ;;  %v245_v13 = vld [vmem:[#allocation2 + $0xd8] sm:$0xff]  ;;  %v309_v15 = vld [vmem:[#allocation2 + $0x150] sm:$0xff]  ;;  %s476_s9 = smul.u32 24, %s723_s8  ;;  %s369_s7 = sshll.u32 %s207_s6, 4  ;;  %s370_s7 = int_to_ptr.vmem [resolvable:$true] %s369_s7 }
  0x1b   : > { %274 = vmatpush.msra.mxu1 %v229_v6  ;;  %317 = vmatpush.msra.mxu2 %v312_v5  ;;  %v227_v11 = vld [vmem:[#allocation2 + $0x60] sm:$0xff]  ;;  %v226_v14 = vld [vmem:[#allocation2 + $0x58] sm:$0xff]  ;;  %v244_v16 = vld [vmem:[#allocation2 + $0xd0] sm:$0xff]  ;;  %s371_s8 = sshll.u32 %s368_s5, 4  ;;  %s583_s13 = scalar_lea.hbm %s771_s4, 32  ;;  %s372_s8 = int_to_ptr.hbm [resolvable:$true] %s371_s8 }
  0x1c   : > { %252 = vmatpush.msra.mxu0 %v247_v7  ;;  %462 = vmatpush.msra.mxu3 %v247_v7  ;;  %v225_v17 = vld [vmem:[#allocation2 + $0x50] sm:$0xff]  ;;  %v308_v18 = vld [vmem:[#allocation2 + $0x148] sm:$0xff]  ;;  %v307_v21 = vld [vmem:[#allocation2 + $0x140] sm:$0xff]  ;;  %s212_s12 = scalar_lea.vmem %s767_s0, %s476_s9  ;;  %s357_s9 = scalar_lea.sflag [#allocation4], %s205_s20 }
  0x1d   : > { %275 = vmatpush.msra.mxu1 %v228_v8  ;;  %318 = vmatpush.msra.mxu2 %v311_v9  ;;  %v243_v19 = vld [vmem:[#allocation2 + $0xc8] sm:$0xff]  ;;  %v242_v22 = vld [vmem:[#allocation2 + $0xc0] sm:$0xff]  ;;  %v306_v24 = vld [vmem:[#allocation2 + $0x138] sm:$0xff]  ;;  %s577_s19 = sshra.s32 %s372_s8, 4  ;;  %s578_s19 = int_to_ptr.hbm [resolvable:$true] %s577_s19 }
  0x1e   : > { %253 = vmatpush.msra.mxu0 %v246_v10  ;;  %463 = vmatpush.msra.mxu3 %v246_v10  ;;  %v224_v20 = vld [vmem:[#allocation2 + $0x48] sm:$0xff]  ;;  %v223_v23 = vld [vmem:[#allocation2 + $0x40] sm:$0xff]  ;;  %v241_v25 = vld [vmem:[#allocation2 + $0xb8] sm:$0xff]  ;;  %s579_s10 = scalar_lea.hbm %s578_s19, 16  ;;  %p584_p3 = scmp.lt.s32.totalorder %s578_s19, %s771_s4 }
  0x1f   : > { %276 = vmatpush.msra.mxu1 %v227_v11  ;;  %319 = vmatpush.msra.mxu2 %v310_v12  ;;  %v222_v26 = vld [vmem:[#allocation2 + $0x38] sm:$0xff]  ;;  %v305_v27 = vld [vmem:[#allocation2 + $0x130] sm:$0xff]  ;;  %v304_v29 = vld [vmem:[#allocation2 + $0x128] sm:$0xff]  ;;  %p580_p0 = scmp.ne.s32.totalorder %s578_s19, %s579_s10  ;;  %p585_p4 = scmp.lt.s32.totalorder %s583_s13, %s579_s10 }
  0x20   : > { %254 = vmatpush.msra.mxu0 %v245_v13  ;;  %464 = vmatpush.msra.mxu3 %v245_v13  ;;  %v240_v28 = vld [vmem:[#allocation2 + $0xb0] sm:$0xff]  ;;  %v239_v31 = vld [vmem:[#allocation2 + $0xa8] sm:$0xff]  ;;  %v303_v33 = vld [vmem:[#allocation2 + $0x120] sm:$0xff] }
  0x21   : > { %277 = vmatpush.msra.mxu1 %v226_v14  ;;  %320 = vmatpush.msra.mxu2 %v309_v15  ;;  %v221_v30 = vld [vmem:[#allocation2 + $0x30] sm:$0xff]  ;;  %v220_v32 = vld [vmem:[#allocation2 + $0x28] sm:$0xff]  ;;  %v238_v34 = vld [vmem:[#allocation2 + $0xa0] sm:$0xff]  ;;  %p581_p1 = pnand %p580_p0, %p699_p5  ;;  %p586_p7 = por %p585_p4, %p584_p3 }
  0x22   : > { %255 = vmatpush.msra.mxu0 %v244_v16  ;;  %465 = vmatpush.msra.mxu3 %v244_v16  ;;  %v219_v35 = vld [vmem:[#allocation2 + $0x20] sm:$0xff]  ;;  %v302_v36 = vld [vmem:[#allocation2 + $0x118] sm:$0xff]  ;;  %v301_v39 = vld [vmem:[#allocation2 + $0x110] sm:$0xff] }
  0x23   : > { %278 = vmatpush.msra.mxu1 %v225_v17  ;;  %321 = vmatpush.msra.mxu2 %v308_v18  ;;  %v237_v37 = vld [vmem:[#allocation2 + $0x98] sm:$0xff]  ;;  %v236_v40 = vld [vmem:[#allocation2 + $0x90] sm:$0xff]  ;;  %v300_v42 = vld [vmem:[#allocation2 + $0x108] sm:$0xff]  ;;  %p582_p2 = pneg %p581_p1 }
  0x24   : > { %256 = vmatpush.msra.mxu0 %v243_v19  ;;  %466 = vmatpush.msra.mxu3 %v243_v19  ;;  %v218_v38 = vld [vmem:[#allocation2 + $0x18] sm:$0xff]  ;;  %v217_v41 = vld [vmem:[#allocation2 + $0x10] sm:$0xff]  ;;  %v235_v43 = vld [vmem:[#allocation2 + $0x88] sm:$0xff] }
  0x25   : > { %279 = vmatpush.msra.mxu1 %v224_v20  ;;  %322 = vmatpush.msra.mxu2 %v307_v21  ;;  %v216_v44 = vld [vmem:[#allocation2 + $0x8] sm:$0xff]  ;;  %v299_v45 = vld [vmem:[#allocation2 + $0x100] sm:$0xff]  ;;  %p587_p8 = pnand %p586_p7, %p582_p2 }
  0x26   : > { %257 = vmatpush.msra.mxu0 %v242_v22  ;;  %467 = vmatpush.msra.mxu3 %v242_v22  ;;  %v234_v46 = vld [vmem:[#allocation2 + $0x80] sm:$0xff]  ;;  %v232_v51 = vld [vmem:[%s212_s12 + $0x9] sm:$0xff] }
  0x27   : > { %280 = vmatpush.msra.mxu1 %v223_v23  ;;  %323 = vmatpush.msra.mxu2 %v306_v24  ;;  %v296_v47 = vld [vmem:[%s212_s12 + $0x2] sm:$0xff]  ;;  %v297_v52 = vld [vmem:[%s212_s12 + $0xa] sm:$0xff]  ;;  %v531_v57 = vld [vmem:[%s769_s2] ss:$0 sm:$0xff] }
  0x28   : > { %258 = vmatpush.msra.mxu0 %v241_v25  ;;  %468 = vmatpush.msra.mxu3 %v241_v25  ;;  %v215_v48 = vld [vmem:[#allocation2] sm:$0xff]  ;;  %v214_v53 = vld [vmem:[%s212_s12 + $0x8] sm:$0xff] }
  0x29   : > { %281 = vmatpush.msra.mxu1 %v222_v26  ;;  %324 = vmatpush.msra.mxu2 %v305_v27  ;;  %v231_v49 = vld [vmem:[%s212_s12 + $0x1] sm:$0xff]  ;;  %v532_v60 = vld [vmem:[%s770_s3] ss:$0 sm:$0xff] }
  0x2a   : > { %259 = vmatpush.msra.mxu0 %v240_v28  ;;  %469 = vmatpush.msra.mxu3 %v240_v28  ;;  %v213_v50 = vld [vmem:[%s212_s12] sm:$0xff] }
  0x2b   : > { %282 = vmatpush.msra.mxu1 %v221_v30  ;;  %325 = vmatpush.msra.mxu2 %v304_v29 }
  0x2c   : > { %260 = vmatpush.msra.mxu0 %v239_v31  ;;  %470 = vmatpush.msra.mxu3 %v239_v31 }
  0x2d   : > { %283 = vmatpush.msra.mxu1 %v220_v32  ;;  %326 = vmatpush.msra.mxu2 %v303_v33 }
  0x2e   : > { %261 = vmatpush.msra.mxu0 %v238_v34  ;;  %471 = vmatpush.msra.mxu3 %v238_v34 }
  0x2f   : > { %284 = vmatpush.msra.mxu1 %v219_v35  ;;  %327 = vmatpush.msra.mxu2 %v302_v36 }
  0x30   : > { %262 = vmatpush.msra.mxu0 %v237_v37  ;;  %472 = vmatpush.msra.mxu3 %v237_v37 }
  0x31   : > { %285 = vmatpush.msra.mxu1 %v218_v38  ;;  %328 = vmatpush.msra.mxu2 %v301_v39 }
  0x32   : > { %263 = vmatpush.msra.mxu0 %v236_v40  ;;  %473 = vmatpush.msra.mxu3 %v236_v40 }
  0x33   : > { %286 = vmatpush.msra.mxu1 %v217_v41  ;;  %329 = vmatpush.msra.mxu2 %v300_v42 }
  0x34   : > { %264 = vmatpush.msra.mxu0 %v235_v43  ;;  %474 = vmatpush.msra.mxu3 %v235_v43 }
  0x35   : > { %287 = vmatpush.msra.mxu1 %v216_v44  ;;  %330 = vmatpush.msra.mxu2 %v299_v45 }
  0x36   : > { %265 = vmatpush.msra.mxu0 %v234_v46  ;;  %331 = vmatmul.f32.vlgmr.msra.gmra.mxu2 %v296_v47 }
  0x37   : > { %288 = vmatpush.msra.mxu1 %v215_v48  ;;  %266 = vmatmul.f32.vlgmr.msra.gmra.mxu0 %v231_v49 }
  0x38   : > { %289 = vmatmul.f32.vlgmr.msra.gmra.mxu1 %v213_v50  ;;  %475 = vmatpush.msra.mxu3 %v234_v46 }
  0x39   : > { %269 = vmatmul.f32.vlgmr.msra.gmra.mxu3 %v232_v51 }
  0x3e   : > { %334 = vmatmul.f32.gmra.mxu2 %v297_v52 }
  0x40   : > { %292 = vmatmul.f32.gmra.mxu1 %v214_v53 }
  0xb4   : > { %v267_v54 = vpop.f32.mrf.mxu0 }
  0xb5   : > { %v290_v55 = vpop.f32.mrf.mxu1 }
  0xb6   : > { %v291_v56 = vadd.f32 %v290_v55, %v267_v54 }
  0xb9   : > { %v332_v58 = vpop.f32.mrf.mxu2 }
  0xba   : > { %v338_v59 = vadd.f32 %v332_v58, %v291_v56 }
  0xbc   : > { %v344_v61 = vmul.f32 %v531_v57, %v338_v59  ;;  %v270_v62 = vpop.f32.mrf.mxu3 }
  0xbd   : > { %v293_v63 = vpop.f32.mrf.mxu1 }
  0xbe   : > { %v350_v0 = vadd.f32 %v532_v60, %v344_v61  ;;  %v294_v1 = vadd.f32 %v293_v63, %v270_v62 }
  0xc0   : > { %v352_v2 = vmax.f32 %v350_v0, 0.0 }
  0xc1   : > { %v335_v3 = vpop.f32.mrf.mxu2 }
  0xc2   : > { %354 = vst [vmem:[%s207_s6] sm:$0xff] %v352_v2  ;;  %v339_v4 = vadd.f32 %v335_v3, %v294_v1 }
  0xc4   : > { %v345_v5 = vmul.f32 %v531_v57, %v339_v4 }
  0xc6   : > { %v351_v6 = vadd.f32 %v532_v60, %v345_v5 }
  0xc8   : > { %v353_v7 = vmax.f32 %v351_v6, 0.0 }
  0xca   : > { %355 = vst [vmem:[%s207_s6 + $0x8] sm:$0xff] %v353_v7 }
  0xcb   : > { %590 = shalt.err (!%p587_p8)
}
  0xcc   : > { %s634_s20 = smov 128   ;;  %s635_s23 = smov 8  }
  0xcd   : > { %481 = dma.vmem_to_hbm [thread:$0]  (%p699_p5), %s370_s7, 256, %s372_s8, %s357_s9, %s634_s20, %s634_s20, %s635_s23  }
  0xce PF: > { %p493_p9 = scmp.ge.s32.totalorder %s629_s18, 2  ;;  %s386_s27 = sand.u32 1, %s617_s15  }
  0xcf   : > { %s387_s28 = scalar_lea.sflag [#allocation4], %s386_s27 }
  0xd0   : > { %p488_p10 = pnand %p493_p9, %p703_p6 }
  0xd2   : > { %p489_p11 = pneg %p488_p10 }
  0xd4   : > { %612 = dma.done.wait (%p489_p11), %s387_s28, 256  }
  0xd5   : > { %614 = vsyncadd (%p489_p11), %s387_s28, 4294967040  ;;  %p15_p12 = scmp.ge.s32.totalorder %s686_s21, 4   ;;  %s774_s15 = smov %s621_s16 }
  0xd6   : > { %s775_s16 = smov %s625_s17  ;;  %s776_s17 = smov %s697_s24 }
  0xd7   : > { %s777_s18 = smov %s686_s21  ;;  %17 = sbr.rel (!%p15_p12) target bundleno = 4 (0x4), region = 78 }
  0xdc   :  { %393 = vsyncpa [#allocation3], 1 }
  0xdd   :  { %395 = vsyncpa [#allocation3 + $0x1], 1 }
  0xde   :  { %396 = vsyncpa [#allocation4], 1 }
  0xdf   :  { %398 = vsyncpa [#allocation4 + $0x1], 1 }

</bundles_post_ra>
